<compile_context>
chip_gen: v5e
topology: v5e:2x2
jax: 0.10.0
libtpu: 0.0.40
codegen_flags: <defaults>
</compile_context>

<pallas_src>
import jax
import jax.numpy as jnp
import numpy as np
from jax.experimental import pallas as pl
from jax.experimental.pallas import tpu as pltpu


def _round_up(x, m):
    return (x + m - 1) // m * m


# --------------------------------------------------------------------------
# Pallas kernel: one M-tile of  (TM, K) @ (K, CoutP) + bias   (K = 9*Cin)
# --------------------------------------------------------------------------
def _conv_gemm_kernel(p_ref, w_ref, b_ref, o_ref):
    # p_ref: (TM, K)      im2col patch tile (K = 9*Cin, tap-major columns)
    # w_ref: (K, CoutP)   weights, resident across the grid
    # b_ref: (1, CoutP)
    # o_ref: (TM, CoutP)
    acc = jnp.broadcast_to(b_ref[...].astype(jnp.float32), o_ref.shape)
    acc = acc + jnp.dot(p_ref[...], w_ref[...],
                        preferred_element_type=jnp.float32)
    o_ref[...] = acc.astype(o_ref.dtype)


# --------------------------------------------------------------------------
# JAX glue: padding + stride-2 patch extraction (im2col) -> (M, 9*Cin)
# --------------------------------------------------------------------------
def _im2col_3x3_s2_p1(x_nhwc):
    n, h, w, c = x_nhwc.shape
    oh = (h + 2 - 3) // 2 + 1
    ow = (w + 2 - 3) // 2 + 1
    xp = jnp.pad(x_nhwc, ((0, 0), (1, 1), (1, 1), (0, 0)))
    taps = []
    for kh in range(3):
        for kw in range(3):
            p = jax.lax.slice(
                xp,
                (0, kh, kw, 0),
                (n, kh + 2 * (oh - 1) + 1, kw + 2 * (ow - 1) + 1, c),
                (1, 2, 2, 1),
            )  # (N, OH, OW, C)
            taps.append(p.reshape(n * oh * ow, c))
    # tap-major columns: column t*Cin + cin matches w.reshape(9*Cin, Cout)
    return jnp.concatenate(taps, axis=1), (n, oh, ow)


def conv3x3_s2_pallas(x_nhwc, w_hwio, bias):
    """3x3 conv, stride 2, padding 1 (NHWC in/out), Pallas GEMM on the MXU."""
    patches, (n, oh, ow) = _im2col_3x3_s2_p1(x_nhwc)
    cin, cout = w_hwio.shape[2], w_hwio.shape[3]
    k = 9 * cin
    m = patches.shape[0]

    # lane-dense output: pad Cout to a multiple of 128
    cout_p = _round_up(cout, 128)
    # M tiling: TM <= 512 f32 rows, M padded to a tile multiple
    if m <= 512:
        tm = _round_up(m, 8)
        m_p = tm
    else:
        tm = 512
        m_p = _round_up(m, tm)

    if m_p != m:
        patches = jnp.pad(patches, ((0, m_p - m), (0, 0)))
    w_flat = w_hwio.reshape(k, cout)
    if cout_p != cout:
        w_flat = jnp.pad(w_flat, ((0, 0), (0, cout_p - cout)))
        bias = jnp.pad(bias, (0, cout_p - cout))

    out = pl.pallas_call(
        _conv_gemm_kernel,
        out_shape=jax.ShapeDtypeStruct((m_p, cout_p), x_nhwc.dtype),
        grid_spec=pltpu.PrefetchScalarGridSpec(
            num_scalar_prefetch=0,
            grid=(m_p // tm,),
            in_specs=[
                pl.BlockSpec((tm, k), lambda i: (i, 0)),        # patch tile
                pl.BlockSpec((k, cout_p), lambda i: (0, 0)),    # weights (resident)
                pl.BlockSpec((1, cout_p), lambda i: (0, 0)),    # bias (resident)
            ],
            out_specs=pl.BlockSpec((tm, cout_p), lambda i: (i, 0)),
        ),
        compiler_params=pltpu.CompilerParams(
            dimension_semantics=("parallel",),
            vmem_limit_bytes=48 * 1024 * 1024,
        ),
    )(patches, w_flat, bias.reshape(1, cout_p))

    out = out[:m, :cout]
    return out.reshape(n, oh, ow, cout)


# --------------------------------------------------------------------------
# Module: parameter init (Caffe2 XavierFill == kaiming_uniform_(a=1)) + forward
# --------------------------------------------------------------------------
def _c2_xavier_conv3x3(key, cin, cout):
    fan_in = cin * 3 * 3
    bound = float(np.sqrt(3.0 / fan_in))  # gain=1 for a=1
    w = jax.random.uniform(key, (3, 3, cin, cout), jnp.float32, -bound, bound)
    b = jnp.zeros((cout,), jnp.float32)
    return w, b


@jax.jit
def _forward(x_nchw, w6, b6, w7, b7):
    x = jnp.transpose(x_nchw, (0, 2, 3, 1))          # NCHW -> NHWC
    p6 = conv3x3_s2_pallas(x, w6, b6)
    # relu applied once here; it fuses into the p7 im2col producer.
    p7 = conv3x3_s2_pallas(jnp.maximum(p6, 0.0), w7, b7)
    return jnp.transpose(p6, (0, 3, 1, 2)), jnp.transpose(p7, (0, 3, 1, 2))


class LastLevelP6P7Pallas:
    def __init__(self, in_channels, out_channels, key):
        k6, k7 = jax.random.split(key)
        self.w6, self.b6 = _c2_xavier_conv3x3(k6, in_channels, out_channels)
        self.w7, self.b7 = _c2_xavier_conv3x3(k7, out_channels, out_channels)

    def __call__(self, x_nchw):
        p6, p7 = _forward(x_nchw, self.w6, self.b6, self.w7, self.b7)
        return [p6, p7]


# --------------------------------------------------------------------------
# Reference (pure XLA) for correctness checking
# --------------------------------------------------------------------------
def _conv_ref(x_nchw, w_hwio, bias, stride=2):
    w_oihw = jnp.transpose(w_hwio, (3, 2, 0, 1))
    y = jax.lax.conv_general_dilated(
        x_nchw, w_oihw, (stride, stride), ((1, 1), (1, 1)),
        dimension_numbers=("NCHW", "OIHW", "NCHW"))
    return y + bias.reshape(1, -1, 1, 1)


if __name__ == "__main__":
    key = jax.random.PRNGKey(0)
    k_param, k_x = jax.random.split(key)

    in_channels, out_channels = 4, 8
    x = jax.random.normal(k_x, (2, in_channels, 16, 16), jnp.float32)

    module = LastLevelP6P7Pallas(in_channels, out_channels, k_param)
    p6, p7 = module(x)
    jax.block_until_ready(p6)
    jax.block_until_ready(p7)

    # sanity-check against XLA conv reference
    p6_ref = _conv_ref(x, module.w6, module.b6)
    p7_ref = _conv_ref(jnp.maximum(p6_ref, 0.0), module.w7, module.b7)
    assert p6.shape == (2, out_channels, 8, 8) and p7.shape == (2, out_channels, 4, 4)
    np.testing.assert_allclose(np.asarray(p6), np.asarray(p6_ref), rtol=1e-4, atol=1e-4)
    np.testing.assert_allclose(np.asarray(p7), np.asarray(p7_ref), rtol=1e-4, atol=1e-4)

    print("KERNEL_OK")
</pallas_src>

<mosaic_0001>
module attributes {stable_mosaic.version = 11 : i64} {
  func.func @_conv_gemm_kernel(%arg0: i32, %arg1: memref<128x36xf32, #tpu.memory_space<vmem>>, %arg2: memref<36x128xf32, #tpu.memory_space<vmem>>, %arg3: memref<1x128xf32, #tpu.memory_space<vmem>>, %arg4: memref<128x128xf32, #tpu.memory_space<vmem>>) attributes {dimension_semantics = [#tpu.dimension_semantics<parallel>], iteration_bounds = array<i64: 1>, scalar_prefetch = 0 : i64, scratch_operands = 0 : i64, tpu.core_type = #tpu.core_type<tc>, window_params = [{transform_indices = @transform_0, window_bounds = array<i64: 128, 36>}, {pipeline_mode = #tpu.pipeline_mode<synchronous>, transform_indices = @transform_1, window_bounds = array<i64: 36, 128>}, {pipeline_mode = #tpu.pipeline_mode<synchronous>, transform_indices = @transform_2, window_bounds = array<i64: 1, 128>}, {transform_indices = @transform_3, window_bounds = array<i64: 128, 128>}]} {
    %c0 = arith.constant 0 : index
    %c0_0 = arith.constant 0 : index
    %0 = vector.load %arg3[%c0, %c0_0] : memref<1x128xf32, #tpu.memory_space<vmem>>, vector<1x128xf32>
    %1 = vector.shape_cast %0 : vector<1x128xf32> to vector<1x128xf32>
    %2 = vector.broadcast %1 : vector<1x128xf32> to vector<128x128xf32>
    %c0_1 = arith.constant 0 : index
    %c0_2 = arith.constant 0 : index
    %3 = vector.load %arg1[%c0_1, %c0_2] : memref<128x36xf32, #tpu.memory_space<vmem>>, vector<128x36xf32>
    %c0_3 = arith.constant 0 : index
    %c0_4 = arith.constant 0 : index
    %4 = vector.load %arg2[%c0_3, %c0_4] : memref<36x128xf32, #tpu.memory_space<vmem>>, vector<36x128xf32>
    %cst = arith.constant dense<0.000000e+00> : vector<128x128xf32>
    %5 = tpu.matmul %3, %4, %cst {dimension_numbers = #tpu.dot_dimension_numbers<[1], [0], [0], [1], [0, 0, 1, 1], [], []>} : vector<128x36xf32>, vector<36x128xf32>, vector<128x128xf32> -> vector<128x128xf32>
    %6 = arith.addf %2, %5 : vector<128x128xf32>
    %c0_5 = arith.constant 0 : index
    %c0_6 = arith.constant 0 : index
    %7 = vector.load %arg4[%c0_5, %c0_6] : memref<128x128xf32, #tpu.memory_space<vmem>>, vector<128x128xf32>
    tpu.vector_store %arg4[%c0_5, %c0_6], %6 {strides = array<i32>} : memref<128x128xf32, #tpu.memory_space<vmem>>, vector<128x128xf32>,
    return
  }
  func.func @transform_0(%arg0: i32) -> (i32, i32) {
    %c0_i32 = arith.constant 0 : i32
    %c0_i32_0 = arith.constant 0 : i32
    return %arg0, %c0_i32 : i32, i32
  }
  func.func @transform_1(%arg0: i32) -> (i32, i32) {
    %c0_i32 = arith.constant 0 : i32
    %c0_i32_0 = arith.constant 0 : i32
    %c0_i32_1 = arith.constant 0 : i32
    return %c0_i32, %c0_i32_0 : i32, i32
  }
  func.func @transform_2(%arg0: i32) -> (i32, i32) {
    %c0_i32 = arith.constant 0 : i32
    %c0_i32_0 = arith.constant 0 : i32
    %c0_i32_1 = arith.constant 0 : i32
    return %c0_i32, %c0_i32_0 : i32, i32
  }
  func.func @transform_3(%arg0: i32) -> (i32, i32) {
    %c0_i32 = arith.constant 0 : i32
    %c0_i32_0 = arith.constant 0 : i32
    return %arg0, %c0_i32 : i32, i32
  }
}

module attributes {stable_mosaic.version = 11 : i64} {
  func.func @_conv_gemm_kernel(%arg0: i32, %arg1: memref<32x72xf32, #tpu.memory_space<vmem>>, %arg2: memref<72x128xf32, #tpu.memory_space<vmem>>, %arg3: memref<1x128xf32, #tpu.memory_space<vmem>>, %arg4: memref<32x128xf32, #tpu.memory_space<vmem>>) attributes {dimension_semantics = [#tpu.dimension_semantics<parallel>], iteration_bounds = array<i64: 1>, scalar_prefetch = 0 : i64, scratch_operands = 0 : i64, tpu.core_type = #tpu.core_type<tc>, window_params = [{transform_indices = @transform_0, window_bounds = array<i64: 32, 72>}, {pipeline_mode = #tpu.pipeline_mode<synchronous>, transform_indices = @transform_1, window_bounds = array<i64: 72, 128>}, {pipeline_mode = #tpu.pipeline_mode<synchronous>, transform_indices = @transform_2, window_bounds = array<i64: 1, 128>}, {transform_indices = @transform_3, window_bounds = array<i64: 32, 128>}]} {
    %c0 = arith.constant 0 : index
    %c0_0 = arith.constant 0 : index
    %0 = vector.load %arg3[%c0, %c0_0] : memref<1x128xf32, #tpu.memory_space<vmem>>, vector<1x128xf32>
    %1 = vector.shape_cast %0 : vector<1x128xf32> to vector<1x128xf32>
    %2 = vector.broadcast %1 : vector<1x128xf32> to vector<32x128xf32>
    %c0_1 = arith.constant 0 : index
    %c0_2 = arith.constant 0 : index
    %3 = vector.load %arg1[%c0_1, %c0_2] : memref<32x72xf32, #tpu.memory_space<vmem>>, vector<32x72xf32>
    %c0_3 = arith.constant 0 : index
    %c0_4 = arith.constant 0 : index
    %4 = vector.load %arg2[%c0_3, %c0_4] : memref<72x128xf32, #tpu.memory_space<vmem>>, vector<72x128xf32>
    %cst = arith.constant dense<0.000000e+00> : vector<32x128xf32>
    %5 = tpu.matmul %3, %4, %cst {dimension_numbers = #tpu.dot_dimension_numbers<[1], [0], [0], [1], [0, 0, 1, 1], [], []>} : vector<32x72xf32>, vector<72x128xf32>, vector<32x128xf32> -> vector<32x128xf32>
    %6 = arith.addf %2, %5 : vector<32x128xf32>
    %c0_5 = arith.constant 0 : index
    %c0_6 = arith.constant 0 : index
    %7 = vector.load %arg4[%c0_5, %c0_6] : memref<32x128xf32, #tpu.memory_space<vmem>>, vector<32x128xf32>
    tpu.vector_store %arg4[%c0_5, %c0_6], %6 {strides = array<i32>} : memref<32x128xf32, #tpu.memory_space<vmem>>, vector<32x128xf32>,
    return
  }
  func.func @transform_0(%arg0: i32) -> (i32, i32) {
    %c0_i32 = arith.constant 0 : i32
    %c0_i32_0 = arith.constant 0 : i32
    return %arg0, %c0_i32 : i32, i32
  }
  func.func @transform_1(%arg0: i32) -> (i32, i32) {
    %c0_i32 = arith.constant 0 : i32
    %c0_i32_0 = arith.constant 0 : i32
    %c0_i32_1 = arith.constant 0 : i32
    return %c0_i32, %c0_i32_0 : i32, i32
  }
  func.func @transform_2(%arg0: i32) -> (i32, i32) {
    %c0_i32 = arith.constant 0 : i32
    %c0_i32_0 = arith.constant 0 : i32
    %c0_i32_1 = arith.constant 0 : i32
    return %c0_i32, %c0_i32_0 : i32, i32
  }
  func.func @transform_3(%arg0: i32) -> (i32, i32) {
    %c0_i32 = arith.constant 0 : i32
    %c0_i32_0 = arith.constant 0 : i32
    return %arg0, %c0_i32 : i32, i32
  }
}

</mosaic_0001>

<bundles_post_ra>
// kernel: _forward.2
= control target key start
LH: loop header
LB: loop body
LE: loop exit
PB: predicated region body
PF: predicated region fallthrough
CT: control target
= control target key end

     0   :  { %vm88_vm0 = vcmask 1043456   ;;  %vm39_vm1 = vcmask 293888   ;;  %s376_s1 = inlined_call_operand.vmem [shape: f32[36,128], index: 1, kind: input, shape index: {}]   ;;  %s377_s0 = inlined_call_operand.vmem [shape: f32[128,36], index: 0, kind: input, shape index: {}]   ;;  %s378_s2 = inlined_call_operand.vmem [shape: f32[1,128], index: 2, kind: input, shape index: {}]   ;;  %s379_s3 = inlined_call_operand.vmem [shape: f32[128,128], index: 3, kind: output, shape index: {}]  }
   0x1   :  { %v38_v0 = vld [vmem:[%s376_s1 + $0x20] sm:$0xf]  ;;  %v37_v1 = vld [vmem:[%s376_s1 + $0x18] sm:$0xff]  ;;  %v36_v2 = vld [vmem:[%s376_s1 + $0x10] sm:$0xff] }
   0x2   :  { %211 = vmatpush.msk.msra.mxu2 %vm88_vm0, %v38_v0  ;;  %212 = vmatpush.msk.msra.mxu3 %vm88_vm0, %v38_v0  ;;  %v35_v3 = vld [vmem:[%s376_s1 + $0x8] sm:$0xff]  ;;  %v34_v4 = vld [vmem:[%s376_s1] sm:$0xff]  ;;  %v28_v13 = vld [vmem:[%s377_s0 + $0x50] sm:$0xff] }
   0x3   :  { %193 = vmatpush.msk.msra.mxu0 %vm88_vm0, %v38_v0  ;;  %210 = vmatpush.msk.msra.mxu1 %vm88_vm0, %v38_v0  ;;  %v26_v5 = vld [vmem:[%s377_s0 + $0x40] sm:$0xff]  ;;  %v27_v9 = vld [vmem:[%s377_s0 + $0x48] sm:$0xff]  ;;  %v32_v14 = vld [vmem:[%s377_s0 + $0x70] sm:$0xff] }
   0x4   :  { %214 = vmatpush.msra.mxu2 %v37_v1  ;;  %215 = vmatpush.msra.mxu3 %v37_v1  ;;  %v30_v6 = vld [vmem:[%s377_s0 + $0x60] sm:$0xff]  ;;  %v31_v10 = vld [vmem:[%s377_s0 + $0x68] sm:$0xff]  ;;  %v20_v15 = vld [vmem:[%s377_s0 + $0x10] sm:$0xff] }
   0x5   :  { %104 = vmatpush.msra.mxu0 %v37_v1  ;;  %213 = vmatpush.msra.mxu1 %v37_v1  ;;  %v18_v7 = vld [vmem:[%s377_s0] sm:$0xff]  ;;  %v19_v11 = vld [vmem:[%s377_s0 + $0x8] sm:$0xff]  ;;  %v24_v16 = vld [vmem:[%s377_s0 + $0x30] sm:$0xff] }
   0x6   :  { %217 = vmatpush.msra.mxu2 %v36_v2  ;;  %218 = vmatpush.msra.mxu3 %v36_v2  ;;  %v22_v8 = vld [vmem:[%s377_s0 + $0x20] sm:$0xff]  ;;  %v23_v12 = vld [vmem:[%s377_s0 + $0x28] sm:$0xff]  ;;  %v29_v17 = vld [vmem:[%s377_s0 + $0x58] sm:$0xff] }
   0x7   :  { %105 = vmatpush.msra.mxu0 %v36_v2  ;;  %216 = vmatpush.msra.mxu1 %v36_v2  ;;  %v33_v18 = vld [vmem:[%s377_s0 + $0x78] sm:$0xff]  ;;  %v225_v21 = vld [vmem:[%s378_s2] ss:$0 sm:$0xff] }
   0x8   :  { %220 = vmatpush.msra.mxu2 %v35_v3  ;;  %221 = vmatpush.msra.mxu3 %v35_v3  ;;  %v21_v19 = vld [vmem:[%s377_s0 + $0x18] sm:$0xff] }
   0x9   :  { %106 = vmatpush.msra.mxu0 %v35_v3  ;;  %219 = vmatpush.msra.mxu1 %v35_v3  ;;  %v25_v20 = vld [vmem:[%s377_s0 + $0x38] sm:$0xff] }
   0xa   :  { %223 = vmatpush.msra.mxu2 %v34_v4  ;;  %224 = vmatpush.msra.mxu3 %v34_v4 }
   0xb   :  { %202 = vmatmul.msk.f32.vlgmr.msra.gmra.mxu2 %vm39_vm1, %v26_v5  ;;  %206 = vmatmul.msk.f32.vlgmr.msra.gmra.mxu3 %vm39_vm1, %v30_v6 }
   0xc   :  { %107 = vmatpush.msra.mxu0 %v34_v4  ;;  %222 = vmatpush.msra.mxu1 %v34_v4 }
   0xd   :  { %194 = vmatmul.msk.f32.vlgmr.msra.gmra.mxu0 %vm39_vm1, %v18_v7  ;;  %198 = vmatmul.msk.f32.vlgmr.msra.gmra.mxu1 %vm39_vm1, %v22_v8 }
  0x13   :  { %203 = vmatmul.msk.f32.gmra.mxu2 %vm39_vm1, %v27_v9  ;;  %207 = vmatmul.msk.f32.gmra.mxu3 %vm39_vm1, %v31_v10 }
  0x15   :  { %195 = vmatmul.msk.f32.gmra.mxu0 %vm39_vm1, %v19_v11  ;;  %199 = vmatmul.msk.f32.gmra.mxu1 %vm39_vm1, %v23_v12 }
  0x1b   :  { %204 = vmatmul.msk.f32.gmra.mxu2 %vm39_vm1, %v28_v13  ;;  %208 = vmatmul.msk.f32.gmra.mxu3 %vm39_vm1, %v32_v14 }
  0x1d   :  { %196 = vmatmul.msk.f32.gmra.mxu0 %vm39_vm1, %v20_v15  ;;  %200 = vmatmul.msk.f32.gmra.mxu1 %vm39_vm1, %v24_v16 }
  0x23   :  { %205 = vmatmul.msk.f32.gmra.mxu2 %vm39_vm1, %v29_v17  ;;  %209 = vmatmul.msk.f32.gmra.mxu3 %vm39_vm1, %v33_v18 }
  0x25   :  { %197 = vmatmul.msk.f32.gmra.mxu0 %vm39_vm1, %v21_v19  ;;  %201 = vmatmul.msk.f32.gmra.mxu1 %vm39_vm1, %v25_v20 }
  0x8a   :  { %v109_v22 = vpop.f32.mrf.mxu0  ;;  %v121_v23 = vpop.f32.mrf.mxu1 }
  0x8b   :  { %v157_v24 = vadd.f32 %v225_v21, %v109_v22  ;;  %v161_v25 = vadd.f32 %v225_v21, %v121_v23 }
  0x8d   :  { %173 = vst [vmem:[%s379_s3] sm:$0xff] %v157_v24 }
  0x8e   :  { %177 = vst [vmem:[%s379_s3 + $0x20] sm:$0xff] %v161_v25  ;;  %v133_v26 = vpop.f32.mrf.mxu2  ;;  %v145_v27 = vpop.f32.mrf.mxu3 }
  0x8f   :  { %v165_v28 = vadd.f32 %v225_v21, %v133_v26  ;;  %v169_v29 = vadd.f32 %v225_v21, %v145_v27 }
  0x91   :  { %181 = vst [vmem:[%s379_s3 + $0x40] sm:$0xff] %v165_v28 }
  0x92   :  { %185 = vst [vmem:[%s379_s3 + $0x60] sm:$0xff] %v169_v29  ;;  %v112_v30 = vpop.f32.mrf.mxu0  ;;  %v124_v31 = vpop.f32.mrf.mxu1 }
  0x93   :  { %v158_v32 = vadd.f32 %v225_v21, %v112_v30  ;;  %v162_v33 = vadd.f32 %v225_v21, %v124_v31 }
  0x95   :  { %174 = vst [vmem:[%s379_s3 + $0x8] sm:$0xff] %v158_v32 }
  0x96   :  { %178 = vst [vmem:[%s379_s3 + $0x28] sm:$0xff] %v162_v33  ;;  %v136_v34 = vpop.f32.mrf.mxu2  ;;  %v148_v35 = vpop.f32.mrf.mxu3 }
  0x97   :  { %v166_v36 = vadd.f32 %v225_v21, %v136_v34  ;;  %v170_v37 = vadd.f32 %v225_v21, %v148_v35 }
  0x99   :  { %182 = vst [vmem:[%s379_s3 + $0x48] sm:$0xff] %v166_v36 }
  0x9a   :  { %186 = vst [vmem:[%s379_s3 + $0x68] sm:$0xff] %v170_v37  ;;  %v115_v38 = vpop.f32.mrf.mxu0  ;;  %v127_v39 = vpop.f32.mrf.mxu1 }
  0x9b   :  { %v159_v40 = vadd.f32 %v225_v21, %v115_v38  ;;  %v163_v41 = vadd.f32 %v225_v21, %v127_v39 }
  0x9d   :  { %175 = vst [vmem:[%s379_s3 + $0x10] sm:$0xff] %v159_v40 }
  0x9e   :  { %179 = vst [vmem:[%s379_s3 + $0x30] sm:$0xff] %v163_v41  ;;  %v139_v42 = vpop.f32.mrf.mxu2  ;;  %v151_v43 = vpop.f32.mrf.mxu3 }
  0x9f   :  { %v167_v44 = vadd.f32 %v225_v21, %v139_v42  ;;  %v171_v45 = vadd.f32 %v225_v21, %v151_v43 }
  0xa1   :  { %183 = vst [vmem:[%s379_s3 + $0x50] sm:$0xff] %v167_v44 }
  0xa2   :  { %187 = vst [vmem:[%s379_s3 + $0x70] sm:$0xff] %v171_v45  ;;  %v118_v46 = vpop.f32.mrf.mxu0  ;;  %v130_v47 = vpop.f32.mrf.mxu1 }
  0xa3   :  { %v160_v48 = vadd.f32 %v225_v21, %v118_v46  ;;  %v164_v49 = vadd.f32 %v225_v21, %v130_v47 }
  0xa5   :  { %176 = vst [vmem:[%s379_s3 + $0x18] sm:$0xff] %v160_v48 }
  0xa6   :  { %180 = vst [vmem:[%s379_s3 + $0x38] sm:$0xff] %v164_v49  ;;  %v142_v50 = vpop.f32.mrf.mxu2  ;;  %v154_v51 = vpop.f32.mrf.mxu3 }
  0xa7   :  { %v168_v52 = vadd.f32 %v225_v21, %v142_v50  ;;  %v172_v53 = vadd.f32 %v225_v21, %v154_v51 }
  0xa9   :  { %184 = vst [vmem:[%s379_s3 + $0x58] sm:$0xff] %v168_v52 }
  0xaa   :  { %188 = vst [vmem:[%s379_s3 + $0x78] sm:$0xff] %v172_v53 }

// kernel: _forward.3
= control target key start
LH: loop header
LB: loop body
LE: loop exit
PB: predicated region body
PF: predicated region fallthrough
CT: control target
= control target key end

     0   :  { %s229_s0 = inlined_call_operand.vmem [shape: f32[32,72], index: 0, kind: input, shape index: {}]   ;;  %s230_s1 = inlined_call_operand.vmem [shape: f32[72,128], index: 1, kind: input, shape index: {}]   ;;  %s231_s2 = inlined_call_operand.vmem [shape: f32[1,128], index: 2, kind: input, shape index: {}]   ;;  %s232_s3 = inlined_call_operand.hbm [shape: f32[32,128], index: 3, kind: output, shape index: {}]  }
   0x1   :  { %v31_v0 = vld [vmem:[%s230_s1 + $0x40] sm:$0xff]  ;;  %v30_v1 = vld [vmem:[%s230_s1 + $0x38] sm:$0xff]  ;;  %v29_v2 = vld [vmem:[%s230_s1 + $0x30] sm:$0xff] }
   0x2   :  { %105 = vmatpush.msra.mxu2 %v31_v0  ;;  %106 = vmatpush.msra.mxu3 %v31_v0  ;;  %v28_v3 = vld [vmem:[%s230_s1 + $0x28] sm:$0xff] }
   0x3   :  { %52 = vmatpush.msra.mxu0 %v31_v0  ;;  %104 = vmatpush.msra.mxu1 %v31_v0 }
   0x4   :  { %108 = vmatpush.msra.mxu2 %v30_v1  ;;  %109 = vmatpush.msra.mxu3 %v30_v1 }
   0x5   :  { %53 = vmatpush.msra.mxu0 %v30_v1  ;;  %107 = vmatpush.msra.mxu1 %v30_v1 }
   0x6   :  { %111 = vmatpush.msra.mxu2 %v29_v2  ;;  %112 = vmatpush.msra.mxu3 %v29_v2 }
   0x7   :  { %8 = vsyncpa [#allocation3], 0  ;;  %v27_v4 = vld [vmem:[%s230_s1 + $0x20] sm:$0xff]  ;;  %54 = vmatpush.msra.mxu0 %v29_v2  ;;  %110 = vmatpush.msra.mxu1 %v29_v2  ;;  %v26_v5 = vld [vmem:[%s230_s1 + $0x18] sm:$0xff]  ;;  %vm32_vm0 = vcmask 588800   ;;  %s161_s12 = smov [#allocation2]  }
   0x8   :  { %114 = vmatpush.msra.mxu2 %v28_v3  ;;  %115 = vmatpush.msra.mxu3 %v28_v3  ;;  %v25_v6 = vld [vmem:[%s230_s1 + $0x10] sm:$0xff]  ;;  %v24_v7 = vld [vmem:[%s230_s1 + $0x8] sm:$0xff]  ;;  %v23_v8 = vld [vmem:[%s230_s1] sm:$0xff]  ;;  %s86_s13 = sshll.u32 %s161_s12, 4  ;;  %s163_s16 = smov 8   ;;  %s87_s13 = int_to_ptr.vmem [resolvable:$true] %s86_s13 }
   0x9   :  { %55 = vmatpush.msra.mxu0 %v28_v3  ;;  %113 = vmatpush.msra.mxu1 %v28_v3  ;;  %v21_v9 = vld [vmem:[%s229_s0 + $0x10] sm:$0xff]  ;;  %v22_v10 = vld [vmem:[%s229_s0 + $0x18] sm:$0xff]  ;;  %v19_v11 = vld [vmem:[%s229_s0] sm:$0xff] }
   0xa   :  { %117 = vmatpush.msra.mxu2 %v27_v4  ;;  %118 = vmatpush.msra.mxu3 %v27_v4  ;;  %v20_v12 = vld [vmem:[%s229_s0 + $0x8] sm:$0xff]  ;;  %v134_v13 = vld [vmem:[%s231_s2] ss:$0 sm:$0xff]  ;;  %s88_s0 = sshll.u32 %s232_s3, 4  ;;  %s162_s2 = smov 128   ;;  %s89_s0 = int_to_ptr.hbm [resolvable:$true] %s88_s0 }
   0xb   :  { %56 = vmatpush.msra.mxu0 %v27_v4  ;;  %116 = vmatpush.msra.mxu1 %v27_v4 }
   0xc   :  { %120 = vmatpush.msra.mxu2 %v26_v5  ;;  %121 = vmatpush.msra.mxu3 %v26_v5 }
   0xd   :  { %57 = vmatpush.msra.mxu0 %v26_v5  ;;  %119 = vmatpush.msra.mxu1 %v26_v5 }
   0xe   :  { %123 = vmatpush.msra.mxu2 %v25_v6  ;;  %124 = vmatpush.msra.mxu3 %v25_v6 }
   0xf   :  { %58 = vmatpush.msra.mxu0 %v25_v6  ;;  %122 = vmatpush.msra.mxu1 %v25_v6 }
  0x10   :  { %126 = vmatpush.msra.mxu2 %v24_v7  ;;  %127 = vmatpush.msra.mxu3 %v24_v7 }
  0x11   :  { %59 = vmatpush.msra.mxu0 %v24_v7  ;;  %125 = vmatpush.msra.mxu1 %v24_v7 }
  0x12   :  { %129 = vmatpush.msra.mxu2 %v23_v8  ;;  %130 = vmatpush.msra.mxu3 %v23_v8 }
  0x13   :  { %102 = vmatmul.msk.f32.vlgmr.msra.gmra.mxu2 %vm32_vm0, %v21_v9  ;;  %103 = vmatmul.msk.f32.vlgmr.msra.gmra.mxu3 %vm32_vm0, %v22_v10 }
  0x14   :  { %60 = vmatpush.msra.mxu0 %v23_v8  ;;  %128 = vmatpush.msra.mxu1 %v23_v8 }
  0x15   :  { %100 = vmatmul.msk.f32.vlgmr.msra.gmra.mxu0 %vm32_vm0, %v19_v11  ;;  %101 = vmatmul.msk.f32.vlgmr.msra.gmra.mxu1 %vm32_vm0, %v20_v12 }
  0x92   :  { %v62_v14 = vpop.f32.mrf.mxu0  ;;  %v65_v15 = vpop.f32.mrf.mxu1 }
  0x93   :  { %v74_v16 = vadd.f32 %v134_v13, %v62_v14  ;;  %v75_v17 = vadd.f32 %v134_v13, %v65_v15 }
  0x95   :  { %78 = vst [vmem:[#allocation2] sm:$0xff] %v74_v16 }
  0x96   :  { %79 = vst [vmem:[#allocation2 + $0x8] sm:$0xff] %v75_v17  ;;  %v68_v18 = vpop.f32.mrf.mxu2  ;;  %v71_v19 = vpop.f32.mrf.mxu3 }
  0x97   :  { %v76_v20 = vadd.f32 %v134_v13, %v68_v18  ;;  %v77_v21 = vadd.f32 %v134_v13, %v71_v19 }
  0x99   :  { %80 = vst [vmem:[#allocation2 + $0x10] sm:$0xff] %v76_v20 }
  0x9a   :  { %81 = vst [vmem:[#allocation2 + $0x18] sm:$0xff] %v77_v21 }
  0x9b   :  { %94 = dma.vmem_to_hbm [thread:$0]  %s87_s13, 512, %s89_s0, [#allocation3], %s162_s2, %s162_s2, %s163_s16  }
  0x9c   :  { %159 = dma.done.wait [#allocation3], 512  }
  0x9d   :  { %160 = vsyncadd [#allocation3], 4294966784 }
  0x9e   :  { %99 = vsyncpa [#allocation3], 1 }

</bundles_post_ra>
